<compile_context>
chip_gen: v7x
topology: tpu7x:2x2x1
jax: 0.10.0
libtpu: 0.0.40
codegen_flags: <defaults>
</compile_context>

<pallas_src>
import functools

import jax
import jax.numpy as jnp
from jax.experimental import pallas as pl
from jax.experimental.pallas import tpu as pltpu


def _shortcut_kernel(x_ref, s_ref, o_ref, *, pad_rows, w_even):
    # x_ref: (Bc, C*Hout, 2*W)  -- row = (c, ho); lanes [0:W) hold input row 2*ho,
    #                              lanes [W:2W) hold input row 2*ho+1 (discarded).
    # s_ref: (W, Wout)          -- one-hot stride-2 column-selection matrix.
    # o_ref: (Bc, C_out*Hout, Wout) with C_out = C + 2*pad.
    bc = x_ref.shape[0]

    # Even-H rows only: contiguous lane slice, no strided access, no extra DMA.
    a_even = x_ref[:, :, :w_even]                            # (Bc, C*Hout, W)

    # W stride-2 subsample as a tiny exact one-hot contraction (batched matmul).
    sel = jnp.broadcast_to(s_ref[...], (bc,) + s_ref.shape)  # (Bc, W, Wout)
    sub = jnp.einsum("bmk,bkn->bmn", a_even, sel,
                     preferred_element_type=jnp.float32)
    sub = sub.astype(o_ref.dtype)                            # (Bc, C*Hout, Wout)

    # Channel zero-pad: build the full padded tile in registers, store once.
    if pad_rows > 0:
        z = jnp.zeros((bc, pad_rows, sub.shape[-1]), dtype=o_ref.dtype)
        o_ref[...] = jnp.concatenate([z, sub, z], axis=1)
    else:
        o_ref[...] = sub


def lambda_layer_shortcut(x, planes, *, max_batch_block=32):
    """Pallas implementation of:
       F.pad(x[:, :, ::2, ::2], (0,0,0,0,planes//4,planes//4), 'constant', 0)
    x: (B, C, H, W), NCHW.
    """
    B, C, H, W = x.shape
    pad = planes // 4
    Hout = -(-H // 2)
    Wout = -(-W // 2)
    C_out = C + 2 * pad

    # Pad H/W up to even (padded rows/cols sit at odd indices, never selected).
    He, We = 2 * Hout, 2 * Wout
    if (He, We) != (H, W):
        x = jnp.pad(x, ((0, 0), (0, 0), (0, He - H), (0, We - W)))

    # Free (contiguous) reshape: fold each pair of input rows into one lane row.
    x_folded = x.reshape(B, C * Hout, 2 * We)

    # Tiny one-hot W-selection: sel[w, wo] = 1 iff w == 2*wo.   (We x Wout)
    sel = (jnp.arange(We)[:, None] == 2 * jnp.arange(Wout)[None, :]).astype(x.dtype)

    # Batch elements per grid step: largest divisor of B up to max_batch_block.
    bc = 1
    for cand in range(min(B, max_batch_block), 0, -1):
        if B % cand == 0:
            bc = cand
            break

    kernel = functools.partial(_shortcut_kernel, pad_rows=pad * Hout, w_even=We)

    out = pl.pallas_call(
        kernel,
        out_shape=jax.ShapeDtypeStruct((B, C_out * Hout, Wout), x.dtype),
        grid_spec=pltpu.PrefetchScalarGridSpec(
            num_scalar_prefetch=0,
            grid=(B // bc,),
            in_specs=[
                pl.BlockSpec((bc, C * Hout, 2 * We), lambda i: (i, 0, 0)),
                pl.BlockSpec((We, Wout), lambda i: (0, 0)),
            ],
            out_specs=pl.BlockSpec((bc, C_out * Hout, Wout), lambda i: (i, 0, 0)),
        ),
        compiler_params=pltpu.CompilerParams(
            dimension_semantics=("parallel",),
        ),
    )(x_folded, sel)

    # Free reshape back to NCHW.
    return out.reshape(B, C_out, Hout, Wout)


def _reference(x, planes):
    pad = planes // 4
    sub = x[:, :, ::2, ::2]
    return jnp.pad(sub, ((0, 0), (pad, pad), (0, 0), (0, 0)))


if __name__ == "__main__":
    key = jax.random.PRNGKey(0)
    B, C, H, W = 2, 16, 16, 16
    planes = 32  # option-A shortcut target width -> pad = planes // 4 = 8 per side

    x = jax.random.normal(key, (B, C, H, W), dtype=jnp.float32)

    out = lambda_layer_shortcut(x, planes)
    out = jax.block_until_ready(out)

    ref = _reference(x, planes)
    assert out.shape == ref.shape, (out.shape, ref.shape)
    assert jnp.allclose(out, ref, atol=1e-6, rtol=1e-6), "mismatch vs reference"

    print("KERNEL_OK")
</pallas_src>

<mosaic_0001>
module attributes {stable_mosaic.version = 11 : i64} {
  func.func @_shortcut_kernel(%arg0: i32, %arg1: memref<2x128x32xf32, #tpu.memory_space<vmem>>, %arg2: memref<16x8xf32, #tpu.memory_space<vmem>>, %arg3: memref<2x256x8xf32, #tpu.memory_space<vmem>>) attributes {dimension_semantics = [#tpu.dimension_semantics<parallel>], iteration_bounds = array<i64: 1>, scalar_prefetch = 0 : i64, scratch_operands = 0 : i64, tpu.core_type = #tpu.core_type<tc>, window_params = [{transform_indices = @transform_0, window_bounds = array<i64: 2, 128, 32>}, {pipeline_mode = #tpu.pipeline_mode<synchronous>, transform_indices = @transform_1, window_bounds = array<i64: 16, 8>}, {transform_indices = @transform_2, window_bounds = array<i64: 2, 256, 8>}]} {
    %c0 = arith.constant 0 : index
    %c0_0 = arith.constant 0 : index
    %c0_1 = arith.constant 0 : index
    %0 = vector.load %arg1[%c0, %c0_0, %c0_1] : memref<2x128x32xf32, #tpu.memory_space<vmem>>, vector<2x128x16xf32>
    %c0_2 = arith.constant 0 : index
    %c0_3 = arith.constant 0 : index
    %1 = vector.load %arg2[%c0_2, %c0_3] : memref<16x8xf32, #tpu.memory_space<vmem>>, vector<16x8xf32>
    %2 = vector.shape_cast %1 : vector<16x8xf32> to vector<1x16x8xf32>
    %3 = vector.broadcast %2 : vector<1x16x8xf32> to vector<2x16x8xf32>
    "tpu.trace_start"() <{level = 10 : i32, message = "bmk,bkn->bmn"}> : () -> ()
    %cst = arith.constant dense<0.000000e+00> : vector<2x128x8xf32>
    %4 = tpu.matmul %0, %3, %cst {dimension_numbers = #tpu.dot_dimension_numbers<[2], [1], [1], [2], [0, 0, 0, 1, 1, 2], [0], [0]>} : vector<2x128x16xf32>, vector<2x16x8xf32>, vector<2x128x8xf32> -> vector<2x128x8xf32>
    %cst_4 = arith.constant 0.000000e+00 : f32
    "tpu.trace_stop"() : () -> ()
    %5 = vector.broadcast %cst_4 : f32 to vector<2x64x8xf32>
    %6 = tpu.concatenate %5, %4, %5 in 1 : vector<2x64x8xf32>, vector<2x128x8xf32>, vector<2x64x8xf32> -> vector<2x256x8xf32>
    %c0_5 = arith.constant 0 : index
    %c0_6 = arith.constant 0 : index
    %c0_7 = arith.constant 0 : index
    %7 = vector.load %arg3[%c0_5, %c0_6, %c0_7] : memref<2x256x8xf32, #tpu.memory_space<vmem>>, vector<2x256x8xf32>
    tpu.vector_store %arg3[%c0_5, %c0_6, %c0_7], %6 {strides = array<i32>} : memref<2x256x8xf32, #tpu.memory_space<vmem>>, vector<2x256x8xf32>,
    return
  }
  func.func @transform_0(%arg0: i32) -> (i32, i32, i32) {
    %c0_i32 = arith.constant 0 : i32
    %c0_i32_0 = arith.constant 0 : i32
    %c0_i32_1 = arith.constant 0 : i32
    return %arg0, %c0_i32, %c0_i32_0 : i32, i32, i32
  }
  func.func @transform_1(%arg0: i32) -> (i32, i32) {
    %c0_i32 = arith.constant 0 : i32
    %c0_i32_0 = arith.constant 0 : i32
    %c0_i32_1 = arith.constant 0 : i32
    return %c0_i32, %c0_i32_0 : i32, i32
  }
  func.func @transform_2(%arg0: i32) -> (i32, i32, i32) {
    %c0_i32 = arith.constant 0 : i32
    %c0_i32_0 = arith.constant 0 : i32
    %c0_i32_1 = arith.constant 0 : i32
    return %arg0, %c0_i32, %c0_i32_0 : i32, i32, i32
  }
}

</mosaic_0001>

<bundles_post_ra>
// kernel: tpu_custom_call.1
= control target key start
LH: loop header
LB: loop body
LE: loop exit
PB: predicated region body
PF: predicated region fallthrough
CT: control target
= control target key end

     0   :  { %vm45_vm0 = vcmask 130048   ;;  %vm432_vm1 = vcmask 64512   ;;  %v634_v35 = vmov 0.0   ;;  %s1040_s1 = inlined_call_operand.vmem [shape: f32[16,8], index: 1, kind: input, shape index: {}]   ;;  %s1041_s0 = inlined_call_operand.vmem [shape: f32[2,128,32], index: 0, kind: input, shape index: {}]   ;;  %s1042_s2 = inlined_call_operand.vmem [shape: f32[2,256,8], index: 2, kind: output, shape index: {}]  }
   0x1   :  { %v43_v0 = vld [vmem:[%s1040_s1] sm:$0xff]  ;;  %v44_v1 = vld [vmem:[%s1040_s1 + $0x8] sm:$0xff]  ;;  %v13_v7 = vld [vmem:[%s1041_s0 + $0x10] sm:$0xff]  ;;  %433 = vst.msk [vmem:[%s1042_s2] sm:$0xff] %vm432_vm1, %v634_v35 }
   0x2   :  { %v11_v2 = vld [vmem:[%s1041_s0] sm:$0xff]  ;;  %v625_v3 = vpack.c.bf16 %v44_v1, %v43_v0  ;;  %v12_v5 = vld [vmem:[%s1041_s0 + $0x8] sm:$0xff]  ;;  %v29_v8 = vld [vmem:[%s1041_s0 + $0x90] sm:$0xff]  ;;  %434 = vst.msk [vmem:[%s1042_s2 + $0x8] sm:$0xff] %vm432_vm1, %v634_v35 }
   0x3   :  { %573 = vmatprep.mubr.msk.f32.mxu0 %vm45_vm0, %v11_v2  ;;  %v27_v4 = vld [vmem:[%s1041_s0 + $0x80] sm:$0xff]  ;;  %v28_v6 = vld [vmem:[%s1041_s0 + $0x88] sm:$0xff]  ;;  %v14_v9 = vld [vmem:[%s1041_s0 + $0x18] sm:$0xff]  ;;  %435 = vst.msk [vmem:[%s1042_s2 + $0x10] sm:$0xff] %vm432_vm1, %v634_v35 }
   0x4   :  { %601 = vmatprep.mubr.msk.f32.mxu1 %vm45_vm0, %v27_v4  ;;  %626 = vmatprep.subr.bf16.mxu0 %v625_v3  ;;  %v30_v10 = vld [vmem:[%s1041_s0 + $0x98] sm:$0xff]  ;;  %v15_v11 = vld [vmem:[%s1041_s0 + $0x20] sm:$0xff]  ;;  %v16_v13 = vld [vmem:[%s1041_s0 + $0x28] sm:$0xff]  ;;  %436 = vst.msk [vmem:[%s1042_s2 + $0x18] sm:$0xff] %vm432_vm1, %v634_v35 }
   0x5   :  { %630 = vmatprep.subr.bf16.mxu1 %v625_v3  ;;  %628 = vmatpush3.bf16.msra.mxu0 %v625_v3  ;;  %v31_v12 = vld [vmem:[%s1041_s0 + $0xa0] sm:$0xff]  ;;  %v32_v14 = vld [vmem:[%s1041_s0 + $0xa8] sm:$0xff]  ;;  %v17_v15 = vld [vmem:[%s1041_s0 + $0x30] sm:$0xff]  ;;  %437 = vst.msk [vmem:[%s1042_s2 + $0x20] sm:$0xff] %vm432_vm1, %v634_v35 }
   0x6   :  { %632 = vmatpush3.bf16.msra.mxu1 %v625_v3  ;;  %v33_v16 = vld [vmem:[%s1041_s0 + $0xb0] sm:$0xff]  ;;  %v18_v17 = vld [vmem:[%s1041_s0 + $0x38] sm:$0xff]  ;;  %v19_v19 = vld [vmem:[%s1041_s0 + $0x40] sm:$0xff]  ;;  %438 = vst.msk [vmem:[%s1042_s2 + $0x28] sm:$0xff] %vm432_vm1, %v634_v35 }
   0x7   :  { %v34_v18 = vld [vmem:[%s1041_s0 + $0xb8] sm:$0xff]  ;;  %v35_v20 = vld [vmem:[%s1041_s0 + $0xc0] sm:$0xff]  ;;  %v20_v21 = vld [vmem:[%s1041_s0 + $0x48] sm:$0xff]  ;;  %439 = vst.msk [vmem:[%s1042_s2 + $0x30] sm:$0xff] %vm432_vm1, %v634_v35 }
   0x8   :  { %574 = vmatmul.mubr.msk.f32.vlgmr.msra.gmra.mrb[0].mxu0 %vm45_vm0, %v12_v5  ;;  %v36_v22 = vld [vmem:[%s1041_s0 + $0xc8] sm:$0xff]  ;;  %v21_v23 = vld [vmem:[%s1041_s0 + $0x50] sm:$0xff]  ;;  %v22_v25 = vld [vmem:[%s1041_s0 + $0x58] sm:$0xff]  ;;  %440 = vst.msk [vmem:[%s1042_s2 + $0x38] sm:$0xff] %vm432_vm1, %v634_v35 }
   0x9   :  { %602 = vmatmul.mubr.msk.f32.vlgmr.msra.gmra.mrb[0].mxu1 %vm45_vm0, %v28_v6  ;;  %576 = vmatprep.mubr.msk.f32.mxu0 %vm45_vm0, %v13_v7  ;;  %v37_v24 = vld [vmem:[%s1041_s0 + $0xd0] sm:$0xff]  ;;  %v38_v26 = vld [vmem:[%s1041_s0 + $0xd8] sm:$0xff]  ;;  %v23_v27 = vld [vmem:[%s1041_s0 + $0x60] sm:$0xff]  ;;  %457 = vst.msk [vmem:[%s1042_s2 + $0xc0] sm:$0xff] %vm432_vm1, %v634_v35 }
   0xa   :  { %604 = vmatprep.mubr.msk.f32.mxu1 %vm45_vm0, %v29_v8  ;;  %v39_v28 = vld [vmem:[%s1041_s0 + $0xe0] sm:$0xff]  ;;  %v24_v29 = vld [vmem:[%s1041_s0 + $0x68] sm:$0xff]  ;;  %v25_v31 = vld [vmem:[%s1041_s0 + $0x70] sm:$0xff]  ;;  %458 = vst.msk [vmem:[%s1042_s2 + $0xc8] sm:$0xff] %vm432_vm1, %v634_v35 }
   0xb   :  { %v40_v30 = vld [vmem:[%s1041_s0 + $0xe8] sm:$0xff]  ;;  %v41_v32 = vld [vmem:[%s1041_s0 + $0xf0] sm:$0xff]  ;;  %v26_v33 = vld [vmem:[%s1041_s0 + $0x78] sm:$0xff]  ;;  %459 = vst.msk [vmem:[%s1042_s2 + $0xd0] sm:$0xff] %vm432_vm1, %v634_v35 }
   0xc   :  { %577 = vmatmul.mubr.msk.f32.gmra.mrb[2].mxu0 %vm45_vm0, %v14_v9  ;;  %v42_v34 = vld [vmem:[%s1041_s0 + $0xf8] sm:$0xff]  ;;  %460 = vst.msk [vmem:[%s1042_s2 + $0xd8] sm:$0xff] %vm432_vm1, %v634_v35  ;;  %461 = vst.msk [vmem:[%s1042_s2 + $0xe0] sm:$0xff] %vm432_vm1, %v634_v35 }
   0xd   :  { %605 = vmatmul.mubr.msk.f32.gmra.mrb[2].mxu1 %vm45_vm0, %v30_v10  ;;  %579 = vmatprep.mubr.msk.f32.mxu0 %vm45_vm0, %v15_v11  ;;  %462 = vst.msk [vmem:[%s1042_s2 + $0xe8] sm:$0xff] %vm432_vm1, %v634_v35  ;;  %463 = vst.msk [vmem:[%s1042_s2 + $0xf0] sm:$0xff] %vm432_vm1, %v634_v35 }
   0xe   :  { %607 = vmatprep.mubr.msk.f32.mxu1 %vm45_vm0, %v31_v12  ;;  %464 = vst.msk [vmem:[%s1042_s2 + $0xf8] sm:$0xff] %vm432_vm1, %v634_v35  ;;  %465 = vst.msk [vmem:[%s1042_s2 + $0x100] sm:$0xff] %vm432_vm1, %v634_v35 }
   0xf   :  { %466 = vst.msk [vmem:[%s1042_s2 + $0x108] sm:$0xff] %vm432_vm1, %v634_v35  ;;  %467 = vst.msk [vmem:[%s1042_s2 + $0x110] sm:$0xff] %vm432_vm1, %v634_v35 }
  0x10   :  { %580 = vmatmul.mubr.msk.f32.gmra.mrb[4].mxu0 %vm45_vm0, %v16_v13  ;;  %468 = vst.msk [vmem:[%s1042_s2 + $0x118] sm:$0xff] %vm432_vm1, %v634_v35  ;;  %469 = vst.msk [vmem:[%s1042_s2 + $0x120] sm:$0xff] %vm432_vm1, %v634_v35 }
  0x11   :  { %608 = vmatmul.mubr.msk.f32.gmra.mrb[4].mxu1 %vm45_vm0, %v32_v14  ;;  %582 = vmatprep.mubr.msk.f32.mxu0 %vm45_vm0, %v17_v15  ;;  %470 = vst.msk [vmem:[%s1042_s2 + $0x128] sm:$0xff] %vm432_vm1, %v634_v35  ;;  %471 = vst.msk [vmem:[%s1042_s2 + $0x130] sm:$0xff] %vm432_vm1, %v634_v35 }
  0x12   :  { %610 = vmatprep.mubr.msk.f32.mxu1 %vm45_vm0, %v33_v16  ;;  %472 = vst.msk [vmem:[%s1042_s2 + $0x138] sm:$0xff] %vm432_vm1, %v634_v35  ;;  %489 = vst.msk [vmem:[%s1042_s2 + $0x1c0] sm:$0xff] %vm432_vm1, %v634_v35 }
  0x13   :  { %490 = vst.msk [vmem:[%s1042_s2 + $0x1c8] sm:$0xff] %vm432_vm1, %v634_v35  ;;  %491 = vst.msk [vmem:[%s1042_s2 + $0x1d0] sm:$0xff] %vm432_vm1, %v634_v35 }
  0x14   :  { %583 = vmatmul.mubr.msk.f32.gmra.mrb[6].mxu0 %vm45_vm0, %v18_v17  ;;  %492 = vst.msk [vmem:[%s1042_s2 + $0x1d8] sm:$0xff] %vm432_vm1, %v634_v35  ;;  %493 = vst.msk [vmem:[%s1042_s2 + $0x1e0] sm:$0xff] %vm432_vm1, %v634_v35 }
  0x15   :  { %611 = vmatmul.mubr.msk.f32.gmra.mrb[6].mxu1 %vm45_vm0, %v34_v18  ;;  %585 = vmatprep.mubr.msk.f32.mxu0 %vm45_vm0, %v19_v19  ;;  %494 = vst.msk [vmem:[%s1042_s2 + $0x1e8] sm:$0xff] %vm432_vm1, %v634_v35  ;;  %495 = vst.msk [vmem:[%s1042_s2 + $0x1f0] sm:$0xff] %vm432_vm1, %v634_v35 }
  0x16   :  { %613 = vmatprep.mubr.msk.f32.mxu1 %vm45_vm0, %v35_v20  ;;  %496 = vst.msk [vmem:[%s1042_s2 + $0x1f8] sm:$0xff] %vm432_vm1, %v634_v35 }
  0x18   :  { %586 = vmatmul.mubr.msk.f32.gmra.mrb[8].mxu0 %vm45_vm0, %v20_v21 }
  0x19   :  { %614 = vmatmul.mubr.msk.f32.gmra.mrb[8].mxu1 %vm45_vm0, %v36_v22  ;;  %588 = vmatprep.mubr.msk.f32.mxu0 %vm45_vm0, %v21_v23 }
  0x1a   :  { %616 = vmatprep.mubr.msk.f32.mxu1 %vm45_vm0, %v37_v24 }
  0x1c   :  { %589 = vmatmul.mubr.msk.f32.gmra.mrb[10].mxu0 %vm45_vm0, %v22_v25 }
  0x1d   :  { %617 = vmatmul.mubr.msk.f32.gmra.mrb[10].mxu1 %vm45_vm0, %v38_v26  ;;  %591 = vmatprep.mubr.msk.f32.mxu0 %vm45_vm0, %v23_v27 }
  0x1e   :  { %619 = vmatprep.mubr.msk.f32.mxu1 %vm45_vm0, %v39_v28 }
  0x20   :  { %592 = vmatmul.mubr.msk.f32.gmra.mrb[12].mxu0 %vm45_vm0, %v24_v29 }
  0x21   :  { %620 = vmatmul.mubr.msk.f32.gmra.mrb[12].mxu1 %vm45_vm0, %v40_v30  ;;  %594 = vmatprep.mubr.msk.f32.mxu0 %vm45_vm0, %v25_v31 }
  0x22   :  { %622 = vmatprep.mubr.msk.f32.mxu1 %vm45_vm0, %v41_v32 }
  0x24   :  { %595 = vmatmul.mubr.msk.f32.gmra.mrb[14].mxu0 %vm45_vm0, %v26_v33 }
  0x25   :  { %623 = vmatmul.mubr.msk.f32.gmra.mrb[14].mxu1 %vm45_vm0, %v42_v34 }
  0xdb   :  { %v575_v36 = vpop.f32.mrb[0].mxu0 }
  0xdc   :  { %v603_v37 = vpop.f32.mrb[0].mxu1  ;;  %442 = vst.msk [vmem:[%s1042_s2 + $0x48] sm:$0xff] %vm432_vm1, %v575_v36  ;;  %v160_v38 = vpop.f32.mrb[1].mxu0 }
  0xdd   :  { %474 = vst.msk [vmem:[%s1042_s2 + $0x148] sm:$0xff] %vm432_vm1, %v603_v37  ;;  %v353_v39 = vpop.f32.mrb[1].mxu1  ;;  %441 = vst.msk [vmem:[%s1042_s2 + $0x40] sm:$0xff] %vm432_vm1, %v160_v38 }
  0xde   :  { %473 = vst.msk [vmem:[%s1042_s2 + $0x140] sm:$0xff] %vm432_vm1, %v353_v39 }
  0xdf   :  { %v578_v40 = vpop.f32.mrb[2].mxu0 }
  0xe0   :  { %v606_v41 = vpop.f32.mrb[2].mxu1  ;;  %444 = vst.msk [vmem:[%s1042_s2 + $0x58] sm:$0xff] %vm432_vm1, %v578_v40  ;;  %v170_v42 = vpop.f32.mrb[3].mxu0 }
  0xe1   :  { %476 = vst.msk [vmem:[%s1042_s2 + $0x158] sm:$0xff] %vm432_vm1, %v606_v41  ;;  %v363_v43 = vpop.f32.mrb[3].mxu1  ;;  %443 = vst.msk [vmem:[%s1042_s2 + $0x50] sm:$0xff] %vm432_vm1, %v170_v42 }
  0xe2   :  { %475 = vst.msk [vmem:[%s1042_s2 + $0x150] sm:$0xff] %vm432_vm1, %v363_v43 }
  0xe3   :  { %v581_v44 = vpop.f32.mrb[4].mxu0 }
  0xe4   :  { %v609_v45 = vpop.f32.mrb[4].mxu1  ;;  %446 = vst.msk [vmem:[%s1042_s2 + $0x68] sm:$0xff] %vm432_vm1, %v581_v44  ;;  %v180_v46 = vpop.f32.mrb[5].mxu0 }
  0xe5   :  { %478 = vst.msk [vmem:[%s1042_s2 + $0x168] sm:$0xff] %vm432_vm1, %v609_v45  ;;  %v373_v47 = vpop.f32.mrb[5].mxu1  ;;  %445 = vst.msk [vmem:[%s1042_s2 + $0x60] sm:$0xff] %vm432_vm1, %v180_v46 }
  0xe6   :  { %477 = vst.msk [vmem:[%s1042_s2 + $0x160] sm:$0xff] %vm432_vm1, %v373_v47 }
  0xe7   :  { %v584_v48 = vpop.f32.mrb[6].mxu0 }
  0xe8   :  { %v612_v49 = vpop.f32.mrb[6].mxu1  ;;  %448 = vst.msk [vmem:[%s1042_s2 + $0x78] sm:$0xff] %vm432_vm1, %v584_v48  ;;  %v190_v50 = vpop.f32.mrb[7].mxu0 }
  0xe9   :  { %480 = vst.msk [vmem:[%s1042_s2 + $0x178] sm:$0xff] %vm432_vm1, %v612_v49  ;;  %v383_v51 = vpop.f32.mrb[7].mxu1  ;;  %447 = vst.msk [vmem:[%s1042_s2 + $0x70] sm:$0xff] %vm432_vm1, %v190_v50 }
  0xea   :  { %479 = vst.msk [vmem:[%s1042_s2 + $0x170] sm:$0xff] %vm432_vm1, %v383_v51 }
  0xeb   :  { %v587_v52 = vpop.f32.mrb[8].mxu0 }
  0xec   :  { %v615_v53 = vpop.f32.mrb[8].mxu1  ;;  %450 = vst.msk [vmem:[%s1042_s2 + $0x88] sm:$0xff] %vm432_vm1, %v587_v52  ;;  %v200_v54 = vpop.f32.mrb[9].mxu0 }
  0xed   :  { %482 = vst.msk [vmem:[%s1042_s2 + $0x188] sm:$0xff] %vm432_vm1, %v615_v53  ;;  %v393_v55 = vpop.f32.mrb[9].mxu1  ;;  %449 = vst.msk [vmem:[%s1042_s2 + $0x80] sm:$0xff] %vm432_vm1, %v200_v54 }
  0xee   :  { %481 = vst.msk [vmem:[%s1042_s2 + $0x180] sm:$0xff] %vm432_vm1, %v393_v55 }
  0xef   :  { %v590_v56 = vpop.f32.mrb[10].mxu0 }
  0xf0   :  { %v618_v57 = vpop.f32.mrb[10].mxu1  ;;  %452 = vst.msk [vmem:[%s1042_s2 + $0x98] sm:$0xff] %vm432_vm1, %v590_v56  ;;  %v210_v58 = vpop.f32.mrb[11].mxu0 }
  0xf1   :  { %484 = vst.msk [vmem:[%s1042_s2 + $0x198] sm:$0xff] %vm432_vm1, %v618_v57  ;;  %v403_v59 = vpop.f32.mrb[11].mxu1  ;;  %451 = vst.msk [vmem:[%s1042_s2 + $0x90] sm:$0xff] %vm432_vm1, %v210_v58 }
  0xf2   :  { %483 = vst.msk [vmem:[%s1042_s2 + $0x190] sm:$0xff] %vm432_vm1, %v403_v59 }
  0xf3   :  { %v593_v60 = vpop.f32.mrb[12].mxu0 }
  0xf4   :  { %v621_v61 = vpop.f32.mrb[12].mxu1  ;;  %454 = vst.msk [vmem:[%s1042_s2 + $0xa8] sm:$0xff] %vm432_vm1, %v593_v60  ;;  %v220_v62 = vpop.f32.mrb[13].mxu0 }
  0xf5   :  { %486 = vst.msk [vmem:[%s1042_s2 + $0x1a8] sm:$0xff] %vm432_vm1, %v621_v61  ;;  %v413_v63 = vpop.f32.mrb[13].mxu1  ;;  %453 = vst.msk [vmem:[%s1042_s2 + $0xa0] sm:$0xff] %vm432_vm1, %v220_v62 }
  0xf6   :  { %485 = vst.msk [vmem:[%s1042_s2 + $0x1a0] sm:$0xff] %vm432_vm1, %v413_v63 }
  0xf7   :  { %v596_v0 = vpop.f32.mrb[14].mxu0 }
  0xf8   :  { %v624_v1 = vpop.f32.mrb[14].mxu1  ;;  %456 = vst.msk [vmem:[%s1042_s2 + $0xb8] sm:$0xff] %vm432_vm1, %v596_v0  ;;  %v230_v2 = vpop.f32.mrb[15].mxu0 }
  0xf9   :  { %488 = vst.msk [vmem:[%s1042_s2 + $0x1b8] sm:$0xff] %vm432_vm1, %v624_v1  ;;  %v423_v3 = vpop.f32.mrb[15].mxu1  ;;  %455 = vst.msk [vmem:[%s1042_s2 + $0xb0] sm:$0xff] %vm432_vm1, %v230_v2 }
  0xfa   :  { %487 = vst.msk [vmem:[%s1042_s2 + $0x1b0] sm:$0xff] %vm432_vm1, %v423_v3 }

</bundles_post_ra>
